<compile_context>
chip_gen: v5e
topology: v5e:2x2
jax: 0.10.0
libtpu: 0.0.40
codegen_flags: <defaults>
</compile_context>

<pallas_src>
import functools
import math
from enum import Enum

import jax
import jax.numpy as jnp
from jax.experimental import pallas as pl
from jax.experimental.pallas import tpu as pltpu


# --------------------------------------------------------------------------------------
# Helpers
# --------------------------------------------------------------------------------------

def _choose_row_tile(H, block_rows):
    """Largest multiple of 8 that divides H and is <= block_rows; else full H."""
    th = min(int(block_rows), int(H))
    th -= th % 8
    while th >= 8:
        if H % th == 0:
            return th
        th -= 8
    return int(H)   # full-extent block is always legal


def _mosaic_params(dim_sem, num_planes, tile_elems):
    """Compiler params with an explicit, tile-derived VMEM budget (v7x-safe)."""
    need = 2 * num_planes * tile_elems * 4          # double-buffered f32 input blocks
    need += 2 * 8 * 128 * 4 + (2 << 20)             # output blocks + scratch + margin
    limit = int(min(max(need, 16 << 20), 64 << 20))
    return pltpu.CompilerParams(dimension_semantics=dim_sem,
                                vmem_limit_bytes=limit)


def _pack_lanes(vals, shape):
    """Place scalars `vals` into lanes 0..len-1 of sublane 0 of a lane-dense block."""
    nd = len(shape)
    row = jax.lax.broadcasted_iota(jnp.int32, shape, nd - 2)
    lane = jax.lax.broadcasted_iota(jnp.int32, shape, nd - 1)
    out = jnp.zeros(shape, jnp.float32)
    for k, v in enumerate(vals):
        out = out + jnp.where((row == 0) & (lane == k), v, 0.0)
    return out


def _lane_pair_helpers(W):
    """Helpers for horizontal (lane-axis) neighbour pairs of (TH, W) tiles.

    Returns (nxt, crop, validf) with pair = (crop(a), nxt(a)) and attribution tensors
    restricted by crop().  128-aligned widths keep full width and use an XLU lane roll
    (the wrapped last column is zeroed by validf); other widths use W-1 cropped slices.
    """
    if W % 128 == 0:
        def nxt(a):
            # == jnp.roll(a, -1, axis=1): a[..., w] -> a[..., w+1] (wraps at last lane)
            return pltpu.roll(a, shift=W - 1, axis=1)

        def crop(a):
            return a

        def validf(like):
            lane = jax.lax.broadcasted_iota(jnp.int32, like.shape, like.ndim - 1)
            return (lane < (W - 1)).astype(jnp.float32)
        return nxt, crop, validf

    def nxt(a):
        return a[:, 1:]

    def crop(a):
        return a[:, :-1]

    def validf(like):
        return jnp.float32(1.0)
    return nxt, crop, validf


def _to_2d(x):
    """Contiguous (no-copy) reshape to 2-D with the innermost >1 dim on the lanes."""
    x = jnp.asarray(x, jnp.float32)
    if x.ndim == 0:
        return x.reshape(1, 1)
    shape = x.shape
    nd = len(shape)
    while nd > 1 and shape[nd - 1] == 1:
        nd -= 1
    if nd == 1:
        return x.reshape(1, shape[0])
    lead = math.prod(shape[:nd - 1])
    return x.reshape(lead, shape[nd - 1])


# --------------------------------------------------------------------------------------
# Pallas kernels
# --------------------------------------------------------------------------------------

def _ew_reduce_kernel(pred_ref, gt_ref, out_ref, *, op):
    """Elementwise loss on a (TR, C) tile; writes one per-tile partial sum."""
    p = pred_ref[...]
    g = gt_ref[...]
    if op == "l1":
        v = jnp.abs(p - g)
    elif op == "logl1":
        v = jnp.log1p(jnp.abs(p - g))
    elif op == "mse":
        d = p - g
        v = d * d
    elif op == "inverse_l1":
        v = jnp.abs(1.0 / (p + 1e-6) - 1.0 / (g + 1e-6))
    else:
        raise ValueError(op)
    out_ref[...] = _pack_lanes([jnp.sum(v)], (1, 8, 128))


def _edge_aware_logl1_kernel(*refs, TH, W, has_mask):
    """EdgeAwareLogL1 partials for one (1, TH, W) row tile.

    Writes [sum_x, count_x, sum_y, count_y] (counts only when a mask is present).
    The previous tile's last row (rgb / logl1 / mask) is carried in VMEM scratch so the
    vertical gradient that crosses the tile boundary is counted exactly once.
    """
    if has_mask:
        (pred_ref, gt_ref, rgb_ref, mask_ref, out_ref,
         c_rgb, c_logl1, c_mask) = refs
    else:
        (pred_ref, gt_ref, rgb_ref, out_ref, c_rgb, c_logl1) = refs
        mask_ref = None
        c_mask = None

    i = pl.program_id(1)            # row-tile index (sequential / "arbitrary")

    @pl.when(i == 0)
    def _init_carry():
        c_rgb[...] = jnp.zeros_like(c_rgb)
        c_logl1[...] = jnp.zeros_like(c_logl1)
        if c_mask is not None:
            c_mask[...] = jnp.zeros_like(c_mask)

    pred = pred_ref[0]              # (TH, W)
    gt = gt_ref[0]
    r = rgb_ref[0, 0]
    g = rgb_ref[1, 0]
    b = rgb_ref[2, 0]
    m = mask_ref[0] if has_mask else None

    logl1 = jnp.log1p(jnp.abs(pred - gt))

    # ---- horizontal (x) direction -----------------------------------------------------
    if W > 1:
        nxt, crop, validf = _lane_pair_helpers(W)
        gx = (jnp.abs(crop(r) - nxt(r)) + jnp.abs(crop(g) - nxt(g))
              + jnp.abs(crop(b) - nxt(b))) * (1.0 / 3.0)
        loss_x = jnp.exp(-gx) * crop(logl1)
        xv = validf(gx)
        if has_mask:
            wx = crop(m) * xv
            sum_x = jnp.sum(loss_x * wx)
            count_x = jnp.sum(wx)
        else:
            sum_x = jnp.sum(loss_x * xv)
            count_x = jnp.float32(0.0)
    else:
        sum_x = jnp.float32(0.0)
        count_x = jnp.float32(0.0)

    # ---- vertical (y) direction: within-tile pairs -------------------------------------
    if TH > 1:
        gy = (jnp.abs(r[:-1, :] - r[1:, :])
              + jnp.abs(g[:-1, :] - g[1:, :])
              + jnp.abs(b[:-1, :] - b[1:, :])) * (1.0 / 3.0)
        loss_y = jnp.exp(-gy) * logl1[:-1, :]
        if has_mask:
            wy = m[:-1, :]
            sum_y = jnp.sum(loss_y * wy)
            count_y = jnp.sum(wy)
        else:
            sum_y = jnp.sum(loss_y)
            count_y = jnp.float32(0.0)
    else:
        sum_y = jnp.float32(0.0)
        count_y = jnp.float32(0.0)

    # ---- vertical (y) direction: boundary pair with the previous tile's last row -------
    gyb = (jnp.abs(c_rgb[0:1, :] - r[0:1, :])
           + jnp.abs(c_rgb[1:2, :] - g[0:1, :])
           + jnp.abs(c_rgb[2:3, :] - b[0:1, :])) * (1.0 / 3.0)
    loss_yb = jnp.exp(-gyb) * c_logl1[...]
    if has_mask:
        wyb = c_mask[...]
        sum_yb = jnp.sum(loss_yb * wyb)
        count_yb = jnp.sum(wyb)
    else:
        sum_yb = jnp.sum(loss_yb)
        count_yb = jnp.float32(0.0)
    prev_valid = (i > 0).astype(jnp.float32)
    sum_y = sum_y + prev_valid * sum_yb
    count_y = count_y + prev_valid * count_yb

    # ---- carry this tile's last row for the next row-tile ------------------------------
    c_rgb[0:1, :] = r[TH - 1:TH, :]
    c_rgb[1:2, :] = g[TH - 1:TH, :]
    c_rgb[2:3, :] = b[TH - 1:TH, :]
    c_logl1[...] = logl1[TH - 1:TH, :]
    if has_mask:
        c_mask[...] = m[TH - 1:TH, :]

    out_ref[...] = _pack_lanes([sum_x, count_x, sum_y, count_y], (1, 1, 8, 128))


def _edge_aware_tv_kernel(d_ref, rgb_ref, out_ref, c_rgb, c_d, *, TH, W):
    """EdgeAwareTV partials: writes [sum_x, sum_y] (counts are static)."""
    i = pl.program_id(1)

    @pl.when(i == 0)
    def _init_carry():
        c_rgb[...] = jnp.zeros_like(c_rgb)
        c_d[...] = jnp.zeros_like(c_d)

    d = d_ref[0]
    r = rgb_ref[0, 0]
    g = rgb_ref[1, 0]
    b = rgb_ref[2, 0]

    if W > 1:
        nxt, crop, validf = _lane_pair_helpers(W)
        gdx = jnp.abs(crop(d) - nxt(d))
        gix = (jnp.abs(crop(r) - nxt(r)) + jnp.abs(crop(g) - nxt(g))
               + jnp.abs(crop(b) - nxt(b))) * (1.0 / 3.0)
        sum_x = jnp.sum(gdx * jnp.exp(-gix) * validf(gdx))
    else:
        sum_x = jnp.float32(0.0)

    if TH > 1:
        gdy = jnp.abs(d[:-1, :] - d[1:, :])
        giy = (jnp.abs(r[:-1, :] - r[1:, :])
               + jnp.abs(g[:-1, :] - g[1:, :])
               + jnp.abs(b[:-1, :] - b[1:, :])) * (1.0 / 3.0)
        sum_y = jnp.sum(gdy * jnp.exp(-giy))
    else:
        sum_y = jnp.float32(0.0)

    gdyb = jnp.abs(c_d[...] - d[0:1, :])
    giyb = (jnp.abs(c_rgb[0:1, :] - r[0:1, :])
            + jnp.abs(c_rgb[1:2, :] - g[0:1, :])
            + jnp.abs(c_rgb[2:3, :] - b[0:1, :])) * (1.0 / 3.0)
    sum_yb = jnp.sum(gdyb * jnp.exp(-giyb))
    sum_y = sum_y + (i > 0).astype(jnp.float32) * sum_yb

    c_d[...] = d[TH - 1:TH, :]
    c_rgb[0:1, :] = r[TH - 1:TH, :]
    c_rgb[1:2, :] = g[TH - 1:TH, :]
    c_rgb[2:3, :] = b[TH - 1:TH, :]

    out_ref[...] = _pack_lanes([sum_x, sum_y], (1, 1, 8, 128))


def _tv_kernel(rgb_ref, out_ref, c_rgb, *, TH, W):
    """TVLoss partials on a 3-channel image tile: writes [sum_h, sum_w]."""
    i = pl.program_id(1)

    @pl.when(i == 0)
    def _init_carry():
        c_rgb[...] = jnp.zeros_like(c_rgb)

    r = rgb_ref[0, 0]
    g = rgb_ref[1, 0]
    b = rgb_ref[2, 0]

    if W > 1:
        nxt, crop, validf = _lane_pair_helpers(W)
        dh = (jnp.abs(crop(r) - nxt(r)) + jnp.abs(crop(g) - nxt(g))
              + jnp.abs(crop(b) - nxt(b)))
        sum_h = jnp.sum(dh * validf(dh))
    else:
        sum_h = jnp.float32(0.0)

    if TH > 1:
        sum_w = jnp.sum(jnp.abs(r[:-1, :] - r[1:, :])
                        + jnp.abs(g[:-1, :] - g[1:, :])
                        + jnp.abs(b[:-1, :] - b[1:, :]))
    else:
        sum_w = jnp.float32(0.0)

    sum_wb = jnp.sum(jnp.abs(c_rgb[0:1, :] - r[0:1, :])
                     + jnp.abs(c_rgb[1:2, :] - g[0:1, :])
                     + jnp.abs(c_rgb[2:3, :] - b[0:1, :]))
    sum_w = sum_w + (i > 0).astype(jnp.float32) * sum_wb

    c_rgb[0:1, :] = r[TH - 1:TH, :]
    c_rgb[1:2, :] = g[TH - 1:TH, :]
    c_rgb[2:3, :] = b[TH - 1:TH, :]

    out_ref[...] = _pack_lanes([sum_h, sum_w], (1, 1, 8, 128))


# --------------------------------------------------------------------------------------
# pallas_call wrappers
# --------------------------------------------------------------------------------------

def _scalar_reduce_loss(pred, gt, op, block_rows):
    p = _to_2d(pred)
    g = _to_2d(gt)
    R, C = p.shape
    n = R * C
    TR = _choose_row_tile(R, block_rows)
    nR = R // TR
    out = pl.pallas_call(
        functools.partial(_ew_reduce_kernel, op=op),
        out_shape=jax.ShapeDtypeStruct((nR, 8, 128), jnp.float32),
        grid=(nR,),
        in_specs=[pl.BlockSpec((TR, C), lambda i: (i, 0)),
                  pl.BlockSpec((TR, C), lambda i: (i, 0))],
        out_specs=pl.BlockSpec((1, 8, 128), lambda i: (i, 0, 0)),
        compiler_params=_mosaic_params(("parallel",), num_planes=2,
                                       tile_elems=TR * C),
    )(p, g)
    s = jnp.sum(out, axis=(0, 1))          # partial-sum reduction (128,)
    return s[0] / jnp.float32(n)


# --------------------------------------------------------------------------------------
# Loss "modules" (JAX side), mirroring the PyTorch classes
# --------------------------------------------------------------------------------------

class L1:
    def __init__(self, implementation="scalar", block_rows=512, **kwargs):
        # TODO(synk): 'per-pixel' implementation not wired up; scalar only.
        assert implementation == "scalar"
        self.block_rows = block_rows

    def __call__(self, pred, gt):
        return _scalar_reduce_loss(pred, gt, "l1", self.block_rows)


class LogL1:
    def __init__(self, implementation="scalar", block_rows=512, **kwargs):
        assert implementation == "scalar"
        self.block_rows = block_rows

    def __call__(self, pred, gt):
        return _scalar_reduce_loss(pred, gt, "logl1", self.block_rows)


class MSE:
    def __init__(self, block_rows=512, **kwargs):
        self.block_rows = block_rows

    def __call__(self, pred, gt):
        return _scalar_reduce_loss(pred, gt, "mse", self.block_rows)


class InverseL1:
    def __init__(self, implementation="scalar", block_rows=512, **kwargs):
        assert implementation == "scalar"
        self.block_rows = block_rows

    def __call__(self, pred, gt):
        return _scalar_reduce_loss(pred, gt, "inverse_l1", self.block_rows)


class EdgeAwareLogL1:
    """Gradient-aware Log-L1 loss (scalar implementation)."""

    def __init__(self, implementation="scalar", block_rows=256, **kwargs):
        # TODO(synk): 'per-pixel' implementation not wired up; scalar only.
        assert implementation == "scalar"
        self.block_rows = block_rows

    def __call__(self, pred, gt, rgb, mask=None):
        # pred/gt/mask: [B, H, W, 1]; rgb: [B, H, W, 3]
        B, H, W, _ = pred.shape
        p = jnp.asarray(pred, jnp.float32).reshape(B, H, W)
        g = jnp.asarray(gt, jnp.float32).reshape(B, H, W)
        # Single transpose to channel-first (one HBM pass) instead of three strided
        # per-channel split copies.
        rgb_cf = jnp.transpose(jnp.asarray(rgb, jnp.float32), (3, 0, 1, 2))
        has_mask = mask is not None

        TH = _choose_row_tile(H, self.block_rows)
        nH = H // TH

        plane_spec = pl.BlockSpec((1, TH, W), lambda bb, ii: (bb, ii, 0))
        rgb_spec = pl.BlockSpec((3, 1, TH, W), lambda bb, ii: (0, bb, ii, 0))
        out_spec = pl.BlockSpec((1, 1, 8, 128), lambda bb, ii: (bb, ii, 0, 0))

        in_specs = [plane_spec, plane_spec, rgb_spec]
        args = [p, g, rgb_cf]
        scratch = [pltpu.VMEM((3, W), jnp.float32),   # carried rgb last row
                   pltpu.VMEM((1, W), jnp.float32)]   # carried logl1 last row
        num_planes = 5
        if has_mask:
            in_specs.append(plane_spec)
            args.append(jnp.asarray(mask, jnp.float32).reshape(B, H, W))
            scratch.append(pltpu.VMEM((1, W), jnp.float32))  # carried mask last row
            num_planes = 6

        out = pl.pallas_call(
            functools.partial(_edge_aware_logl1_kernel, TH=TH, W=W, has_mask=has_mask),
            out_shape=jax.ShapeDtypeStruct((B, nH, 8, 128), jnp.float32),
            grid=(B, nH),
            in_specs=in_specs,
            out_specs=out_spec,
            scratch_shapes=scratch,
            compiler_params=_mosaic_params(("parallel", "arbitrary"),
                                           num_planes=num_planes,
                                           tile_elems=TH * W),
        )(*args)

        s = jnp.sum(out, axis=(0, 1, 2))   # (128,)
        if has_mask:
            return s[0] / s[1] + s[2] / s[3]
        nx = jnp.float32(B * H * (W - 1))
        ny = jnp.float32(B * (H - 1) * W)
        return s[0] / nx + s[2] / ny


class EdgeAwareTV:
    def __init__(self, block_rows=256, **kwargs):
        self.block_rows = block_rows

    def __call__(self, depth, rgb):
        # depth: [B, H, W, 1]; rgb: [B, H, W, 3]
        B, H, W, _ = depth.shape
        d = jnp.asarray(depth, jnp.float32).reshape(B, H, W)
        rgb_cf = jnp.transpose(jnp.asarray(rgb, jnp.float32), (3, 0, 1, 2))

        TH = _choose_row_tile(H, self.block_rows)
        nH = H // TH

        out = pl.pallas_call(
            functools.partial(_edge_aware_tv_kernel, TH=TH, W=W),
            out_shape=jax.ShapeDtypeStruct((B, nH, 8, 128), jnp.float32),
            grid=(B, nH),
            in_specs=[pl.BlockSpec((1, TH, W), lambda bb, ii: (bb, ii, 0)),
                      pl.BlockSpec((3, 1, TH, W), lambda bb, ii: (0, bb, ii, 0))],
            out_specs=pl.BlockSpec((1, 1, 8, 128), lambda bb, ii: (bb, ii, 0, 0)),
            scratch_shapes=[pltpu.VMEM((3, W), jnp.float32),
                            pltpu.VMEM((1, W), jnp.float32)],
            compiler_params=_mosaic_params(("parallel", "arbitrary"),
                                           num_planes=4, tile_elems=TH * W),
        )(d, rgb_cf)

        s = jnp.sum(out, axis=(0, 1, 2))
        nx = jnp.float32(B * H * (W - 1))
        ny = jnp.float32(B * (H - 1) * W)
        return s[0] / nx + s[1] / ny


class TVLoss:
    def __init__(self, block_rows=256, **kwargs):
        self.block_rows = block_rows

    def __call__(self, pred):
        # pred: [B, H, W, 3]
        B, H, W, C = pred.shape
        assert C == 3
        rgb_cf = jnp.transpose(jnp.asarray(pred, jnp.float32), (3, 0, 1, 2))

        TH = _choose_row_tile(H, self.block_rows)
        nH = H // TH

        out = pl.pallas_call(
            functools.partial(_tv_kernel, TH=TH, W=W),
            out_shape=jax.ShapeDtypeStruct((B, nH, 8, 128), jnp.float32),
            grid=(B, nH),
            in_specs=[pl.BlockSpec((3, 1, TH, W), lambda bb, ii: (0, bb, ii, 0))],
            out_specs=pl.BlockSpec((1, 1, 8, 128), lambda bb, ii: (bb, ii, 0, 0)),
            scratch_shapes=[pltpu.VMEM((3, W), jnp.float32)],
            compiler_params=_mosaic_params(("parallel", "arbitrary"),
                                           num_planes=3, tile_elems=TH * W),
        )(rgb_cf)

        s = jnp.sum(out, axis=(0, 1, 2))
        nh = jnp.float32(B * H * (W - 1) * C)
        nw = jnp.float32(B * (H - 1) * W * C)
        return s[0] / nh + s[1] / nw


class DepthLossType(Enum):
    MSE = "mse"
    L1 = "L1"
    LogL1 = "LogL1"
    HuberL1 = "HuberL1"
    TV = "TV"
    EdgeAwareLogL1 = "EdgeAwareLogL1"
    EdgeAwareTV = "EdgeAwareTV"
    InverseL1 = "InverseL1"


class DepthLoss:
    """Factory method class for various depth losses (Pallas-backed)."""

    def __init__(self, depth_loss_type: DepthLossType, **kwargs):
        self.depth_loss_type = depth_loss_type
        self.kwargs = kwargs
        self.loss = self._get_loss_instance()

    def __call__(self, *args):
        return self.loss(*args)

    forward = __call__

    def _get_loss_instance(self):
        if self.depth_loss_type == DepthLossType.MSE:
            return MSE(**self.kwargs)
        if self.depth_loss_type == DepthLossType.L1:
            return L1(**self.kwargs)
        if self.depth_loss_type == DepthLossType.InverseL1:
            return InverseL1(**self.kwargs)
        if self.depth_loss_type == DepthLossType.LogL1:
            return LogL1(**self.kwargs)
        if self.depth_loss_type == DepthLossType.EdgeAwareLogL1:
            return EdgeAwareLogL1(**self.kwargs)
        if self.depth_loss_type == DepthLossType.EdgeAwareTV:
            return EdgeAwareTV(**self.kwargs)
        if self.depth_loss_type == DepthLossType.TV:
            return TVLoss(**self.kwargs)
        # TODO(synk): HuberL1 requires dynamic-shape boolean selection; not implemented.
        raise ValueError(f"Unsupported loss type: {self.depth_loss_type}")


# --------------------------------------------------------------------------------------
# Pure-JAX references (for verification only)
# --------------------------------------------------------------------------------------

def _ref_edge_aware_logl1(pred, gt, rgb, mask):
    logl1 = jnp.log(1.0 + jnp.abs(pred - gt))
    gix = jnp.mean(jnp.abs(rgb[:, :, :-1, :] - rgb[:, :, 1:, :]), -1, keepdims=True)
    giy = jnp.mean(jnp.abs(rgb[:, :-1, :, :] - rgb[:, 1:, :, :]), -1, keepdims=True)
    loss_x = jnp.exp(-gix) * logl1[:, :, :-1, :]
    loss_y = jnp.exp(-giy) * logl1[:, :-1, :, :]
    mx = mask[:, :, :-1, :].astype(jnp.float32)
    my = mask[:, :-1, :, :].astype(jnp.float32)
    return (loss_x * mx).sum() / mx.sum() + (loss_y * my).sum() / my.sum()


def _ref_edge_aware_tv(depth, rgb):
    gdx = jnp.abs(depth[:, :, :-1, :] - depth[:, :, 1:, :])
    gdy = jnp.abs(depth[:, :-1, :, :] - depth[:, 1:, :, :])
    gix = jnp.mean(jnp.abs(rgb[:, :, :-1, :] - rgb[:, :, 1:, :]), -1, keepdims=True)
    giy = jnp.mean(jnp.abs(rgb[:, :-1, :, :] - rgb[:, 1:, :, :]), -1, keepdims=True)
    return (gdx * jnp.exp(-gix)).mean() + (gdy * jnp.exp(-giy)).mean()


# --------------------------------------------------------------------------------------
# Main
# --------------------------------------------------------------------------------------

if __name__ == "__main__":
    key = jax.random.PRNGKey(0)
    k1, k2, k3, k4 = jax.random.split(key, 4)

    B, H, W = 2, 16, 16
    pred = jax.random.uniform(k1, (B, H, W, 1), jnp.float32) * 10.0
    gt = jax.random.uniform(k2, (B, H, W, 1), jnp.float32) * 10.0
    rgb = jax.random.uniform(k3, (B, H, W, 3), jnp.float32)
    mask = jax.random.uniform(k4, (B, H, W, 1), jnp.float32) > 0.3

    # EdgeAwareLogL1 (scalar) with mask — multi-row-tile path (exercises the VMEM carry).
    loss_fn = DepthLoss(DepthLossType.EdgeAwareLogL1, implementation="scalar",
                        block_rows=8)
    out = jax.block_until_ready(loss_fn(pred, gt, rgb, mask))
    ref = _ref_edge_aware_logl1(pred, gt, rgb, mask)
    assert abs(float(out) - float(ref)) < 1e-4, (float(out), float(ref))

    # Same loss, single-tile path (default block_rows).
    loss_fn1 = DepthLoss(DepthLossType.EdgeAwareLogL1, implementation="scalar")
    out1 = jax.block_until_ready(loss_fn1(pred, gt, rgb, mask))
    assert abs(float(out1) - float(ref)) < 1e-4, (float(out1), float(ref))

    # EdgeAwareLogL1 without mask (mask input skipped, static counts).
    out_nm = jax.block_until_ready(loss_fn(pred, gt, rgb, None))
    ref_nm = _ref_edge_aware_logl1(pred, gt, rgb, jnp.ones_like(mask))
    assert abs(float(out_nm) - float(ref_nm)) < 1e-4, (float(out_nm), float(ref_nm))

    # Simple element-wise losses (row-tiled grid).
    l1 = jax.block_until_ready(DepthLoss(DepthLossType.L1, block_rows=8)(pred, gt))
    assert abs(float(l1) - float(jnp.abs(pred - gt).mean())) < 1e-4

    logl1 = jax.block_until_ready(DepthLoss(DepthLossType.LogL1, block_rows=8)(pred, gt))
    assert abs(float(logl1) - float(jnp.log(1 + jnp.abs(pred - gt)).mean())) < 1e-4

    mse = jax.block_until_ready(DepthLoss(DepthLossType.MSE, block_rows=8)(pred, gt))
    assert abs(float(mse) - float(((pred - gt) ** 2).mean())) < 1e-3

    inv = jax.block_until_ready(DepthLoss(DepthLossType.InverseL1, block_rows=8)(pred, gt))
    assert abs(float(inv) - float(jnp.abs(1 / (pred + 1e-6) - 1 / (gt + 1e-6)).mean())) < 1e-4

    eatv = jax.block_until_ready(DepthLoss(DepthLossType.EdgeAwareTV, block_rows=8)(pred, rgb))
    assert abs(float(eatv) - float(_ref_edge_aware_tv(pred, rgb))) < 1e-4

    tv = jax.block_until_ready(DepthLoss(DepthLossType.TV, block_rows=8)(rgb))
    tv_ref = (jnp.abs(rgb[:, :, :-1, :] - rgb[:, :, 1:, :]).mean()
              + jnp.abs(rgb[:, :-1, :, :] - rgb[:, 1:, :, :]).mean())
    assert abs(float(tv) - float(tv_ref)) < 1e-4

    print("KERNEL_OK")
</pallas_src>

<mosaic_0001>
module attributes {stable_mosaic.version = 11 : i64} {
  func.func @_edge_aware_logl1_kernel(%arg0: i32, %arg1: i32, %arg2: memref<1x8x16xf32, #tpu.memory_space<vmem>>, %arg3: memref<1x8x16xf32, #tpu.memory_space<vmem>>, %arg4: memref<3x1x8x16xf32, #tpu.memory_space<vmem>>, %arg5: memref<1x8x16xf32, #tpu.memory_space<vmem>>, %arg6: memref<1x1x8x128xf32, #tpu.memory_space<vmem>>, %arg7: memref<3x16xf32, #tpu.memory_space<vmem>>, %arg8: memref<1x16xf32, #tpu.memory_space<vmem>>, %arg9: memref<1x16xf32, #tpu.memory_space<vmem>>) attributes {dimension_semantics = [#tpu.dimension_semantics<parallel>, #tpu.dimension_semantics<arbitrary>], iteration_bounds = array<i64: 2, 2>, scalar_prefetch = 0 : i64, scratch_operands = 3 : i64, tpu.core_type = #tpu.core_type<tc>, window_params = [{transform_indices = @transform_0, window_bounds = array<i64: 1, 8, 16>}, {transform_indices = @transform_1, window_bounds = array<i64: 1, 8, 16>}, {transform_indices = @transform_2, window_bounds = array<i64: 3, 1, 8, 16>}, {transform_indices = @transform_3, window_bounds = array<i64: 1, 8, 16>}, {transform_indices = @transform_4, window_bounds = array<i64: 1, 1, 8, 128>}]} {
    %c0_i32 = arith.constant 0 : i32
    %0 = arith.cmpi eq, %arg1, %c0_i32 : i32
    %1 = arith.extui %0 : i1 to i32
    %c0_i32_0 = arith.constant 0 : i32
    %2 = arith.cmpi ne, %1, %c0_i32_0 : i32
    scf.if %2 {
      %cst_66 = arith.constant 0.000000e+00 : f32
      %170 = vector.broadcast %cst_66 : f32 to vector<3x16xf32>
      %c0_67 = arith.constant 0 : index
      %c0_68 = arith.constant 0 : index
      %171 = vector.load %arg7[%c0_67, %c0_68] : memref<3x16xf32, #tpu.memory_space<vmem>>, vector<3x16xf32>
      tpu.vector_store %arg7[%c0_67, %c0_68], %170 {strides = array<i32>} : memref<3x16xf32, #tpu.memory_space<vmem>>, vector<3x16xf32>,
      %cst_69 = arith.constant 0.000000e+00 : f32
      %172 = vector.broadcast %cst_69 : f32 to vector<1x16xf32>
      %c0_70 = arith.constant 0 : index
      %c0_71 = arith.constant 0 : index
      %173 = vector.load %arg8[%c0_70, %c0_71] : memref<1x16xf32, #tpu.memory_space<vmem>>, vector<1x16xf32>
      tpu.vector_store %arg8[%c0_70, %c0_71], %172 {strides = array<i32>} : memref<1x16xf32, #tpu.memory_space<vmem>>, vector<1x16xf32>,
      %cst_72 = arith.constant 0.000000e+00 : f32
      %174 = vector.broadcast %cst_72 : f32 to vector<1x16xf32>
      %c0_73 = arith.constant 0 : index
      %c0_74 = arith.constant 0 : index
      %175 = vector.load %arg9[%c0_73, %c0_74] : memref<1x16xf32, #tpu.memory_space<vmem>>, vector<1x16xf32>
      tpu.vector_store %arg9[%c0_73, %c0_74], %174 {strides = array<i32>} : memref<1x16xf32, #tpu.memory_space<vmem>>, vector<1x16xf32>,
    } else {
    }
    %c0 = arith.constant 0 : index
    %c0_1 = arith.constant 0 : index
    %c0_2 = arith.constant 0 : index
    %3 = vector.load %arg2[%c0, %c0_1, %c0_2] : memref<1x8x16xf32, #tpu.memory_space<vmem>>, vector<1x8x16xf32>
    %4 = vector.shape_cast %3 : vector<1x8x16xf32> to vector<8x16xf32>
    %c0_3 = arith.constant 0 : index
    %c0_4 = arith.constant 0 : index
    %c0_5 = arith.constant 0 : index
    %5 = vector.load %arg3[%c0_3, %c0_4, %c0_5] : memref<1x8x16xf32, #tpu.memory_space<vmem>>, vector<1x8x16xf32>
    %6 = vector.shape_cast %5 : vector<1x8x16xf32> to vector<8x16xf32>
    %c0_6 = arith.constant 0 : index
    %c0_7 = arith.constant 0 : index
    %c0_8 = arith.constant 0 : index
    %c0_9 = arith.constant 0 : index
    %7 = vector.load %arg4[%c0_6, %c0_7, %c0_8, %c0_9] : memref<3x1x8x16xf32, #tpu.memory_space<vmem>>, vector<1x1x8x16xf32>
    %8 = vector.shape_cast %7 : vector<1x1x8x16xf32> to vector<8x16xf32>
    %c1 = arith.constant 1 : index
    %c0_10 = arith.constant 0 : index
    %c0_11 = arith.constant 0 : index
    %c0_12 = arith.constant 0 : index
    %9 = vector.load %arg4[%c1, %c0_10, %c0_11, %c0_12] : memref<3x1x8x16xf32, #tpu.memory_space<vmem>>, vector<1x1x8x16xf32>
    %10 = vector.shape_cast %9 : vector<1x1x8x16xf32> to vector<8x16xf32>
    %c2 = arith.constant 2 : index
    %c0_13 = arith.constant 0 : index
    %c0_14 = arith.constant 0 : index
    %c0_15 = arith.constant 0 : index
    %11 = vector.load %arg4[%c2, %c0_13, %c0_14, %c0_15] : memref<3x1x8x16xf32, #tpu.memory_space<vmem>>, vector<1x1x8x16xf32>
    %12 = vector.shape_cast %11 : vector<1x1x8x16xf32> to vector<8x16xf32>
    %c0_16 = arith.constant 0 : index
    %c0_17 = arith.constant 0 : index
    %c0_18 = arith.constant 0 : index
    %13 = vector.load %arg5[%c0_16, %c0_17, %c0_18] : memref<1x8x16xf32, #tpu.memory_space<vmem>>, vector<1x8x16xf32>
    %14 = vector.shape_cast %13 : vector<1x8x16xf32> to vector<8x16xf32>
    %15 = arith.subf %4, %6 : vector<8x16xf32>
    %16 = math.absf %15 : vector<8x16xf32>
    %17 = math.log1p %16 : vector<8x16xf32>
    %18 = vector.extract_strided_slice %8 {offsets = [0, 0], sizes = [8, 15], strides = [1, 1]} : vector<8x16xf32> to vector<8x15xf32>
    %19 = vector.extract_strided_slice %8 {offsets = [0, 1], sizes = [8, 15], strides = [1, 1]} : vector<8x16xf32> to vector<8x15xf32>
    %20 = arith.subf %18, %19 : vector<8x15xf32>
    %21 = math.absf %20 : vector<8x15xf32>
    %22 = vector.extract_strided_slice %10 {offsets = [0, 0], sizes = [8, 15], strides = [1, 1]} : vector<8x16xf32> to vector<8x15xf32>
    %23 = vector.extract_strided_slice %10 {offsets = [0, 1], sizes = [8, 15], strides = [1, 1]} : vector<8x16xf32> to vector<8x15xf32>
    %24 = arith.subf %22, %23 : vector<8x15xf32>
    %25 = math.absf %24 : vector<8x15xf32>
    %26 = arith.addf %21, %25 : vector<8x15xf32>
    %27 = vector.extract_strided_slice %12 {offsets = [0, 0], sizes = [8, 15], strides = [1, 1]} : vector<8x16xf32> to vector<8x15xf32>
    %28 = vector.extract_strided_slice %12 {offsets = [0, 1], sizes = [8, 15], strides = [1, 1]} : vector<8x16xf32> to vector<8x15xf32>
    %29 = arith.subf %27, %28 : vector<8x15xf32>
    %30 = math.absf %29 : vector<8x15xf32>
    %31 = arith.addf %26, %30 : vector<8x15xf32>
    %cst = arith.constant 0.333333343 : f32
    %32 = vector.broadcast %cst : f32 to vector<8x15xf32>
    %33 = arith.mulf %31, %32 : vector<8x15xf32>
    %cst_19 = arith.constant 0.000000e+00 : f32
    %34 = vector.broadcast %cst_19 : f32 to vector<8x15xf32>
    %35 = arith.subf %34, %33 : vector<8x15xf32>
    %36 = math.exp %35 : vector<8x15xf32>
    %37 = vector.extract_strided_slice %17 {offsets = [0, 0], sizes = [8, 15], strides = [1, 1]} : vector<8x16xf32> to vector<8x15xf32>
    %38 = arith.mulf %36, %37 : vector<8x15xf32>
    %39 = vector.extract_strided_slice %14 {offsets = [0, 0], sizes = [8, 15], strides = [1, 1]} : vector<8x16xf32> to vector<8x15xf32>
    %cst_20 = arith.constant 1.000000e+00 : f32
    %40 = vector.broadcast %cst_20 : f32 to vector<8x15xf32>
    %41 = arith.mulf %39, %40 : vector<8x15xf32>
    %42 = arith.mulf %38, %41 : vector<8x15xf32>
    %43 = vector.shape_cast %42 : vector<8x15xf32> to vector<1x8x15xf32>
    %cst_21 = arith.constant dense<0.000000e+00> : vector<1xf32>
    %44 = vector.multi_reduction <add>, %43, %cst_21 [1, 2] : vector<1x8x15xf32> to vector<1xf32>
    %45 = vector.shape_cast %44 : vector<1xf32> to vector<1x1x1xf32>
    %46 = vector.extract %45[0, 0, 0] : f32 from vector<1x1x1xf32>
    %47 = vector.shape_cast %41 : vector<8x15xf32> to vector<1x8x15xf32>
    %cst_22 = arith.constant dense<0.000000e+00> : vector<1xf32>
    %48 = vector.multi_reduction <add>, %47, %cst_22 [1, 2] : vector<1x8x15xf32> to vector<1xf32>
    %49 = vector.shape_cast %48 : vector<1xf32> to vector<1x1x1xf32>
    %50 = vector.extract %49[0, 0, 0] : f32 from vector<1x1x1xf32>
    %51 = vector.extract_strided_slice %8 {offsets = [0, 0], sizes = [7, 16], strides = [1, 1]} : vector<8x16xf32> to vector<7x16xf32>
    %52 = vector.extract_strided_slice %8 {offsets = [1, 0], sizes = [7, 16], strides = [1, 1]} : vector<8x16xf32> to vector<7x16xf32>
    %53 = arith.subf %51, %52 : vector<7x16xf32>
    %54 = math.absf %53 : vector<7x16xf32>
    %55 = vector.extract_strided_slice %10 {offsets = [0, 0], sizes = [7, 16], strides = [1, 1]} : vector<8x16xf32> to vector<7x16xf32>
    %56 = vector.extract_strided_slice %10 {offsets = [1, 0], sizes = [7, 16], strides = [1, 1]} : vector<8x16xf32> to vector<7x16xf32>
    %57 = arith.subf %55, %56 : vector<7x16xf32>
    %58 = math.absf %57 : vector<7x16xf32>
    %59 = arith.addf %54, %58 : vector<7x16xf32>
    %60 = vector.extract_strided_slice %12 {offsets = [0, 0], sizes = [7, 16], strides = [1, 1]} : vector<8x16xf32> to vector<7x16xf32>
    %61 = vector.extract_strided_slice %12 {offsets = [1, 0], sizes = [7, 16], strides = [1, 1]} : vector<8x16xf32> to vector<7x16xf32>
    %62 = arith.subf %60, %61 : vector<7x16xf32>
    %63 = math.absf %62 : vector<7x16xf32>
    %64 = arith.addf %59, %63 : vector<7x16xf32>
    %cst_23 = arith.constant 0.333333343 : f32
    %65 = vector.broadcast %cst_23 : f32 to vector<7x16xf32>
    %66 = arith.mulf %64, %65 : vector<7x16xf32>
    %cst_24 = arith.constant 0.000000e+00 : f32
    %67 = vector.broadcast %cst_24 : f32 to vector<7x16xf32>
    %68 = arith.subf %67, %66 : vector<7x16xf32>
    %69 = math.exp %68 : vector<7x16xf32>
    %70 = vector.extract_strided_slice %17 {offsets = [0, 0], sizes = [7, 16], strides = [1, 1]} : vector<8x16xf32> to vector<7x16xf32>
    %71 = arith.mulf %69, %70 : vector<7x16xf32>
    %72 = vector.extract_strided_slice %14 {offsets = [0, 0], sizes = [7, 16], strides = [1, 1]} : vector<8x16xf32> to vector<7x16xf32>
    %73 = arith.mulf %71, %72 : vector<7x16xf32>
    %74 = vector.shape_cast %73 : vector<7x16xf32> to vector<1x7x16xf32>
    %cst_25 = arith.constant dense<0.000000e+00> : vector<1xf32>
    %75 = vector.multi_reduction <add>, %74, %cst_25 [1, 2] : vector<1x7x16xf32> to vector<1xf32>
    %76 = vector.shape_cast %75 : vector<1xf32> to vector<1x1x1xf32>
    %77 = vector.extract %76[0, 0, 0] : f32 from vector<1x1x1xf32>
    %78 = vector.shape_cast %72 : vector<7x16xf32> to vector<1x7x16xf32>
    %cst_26 = arith.constant dense<0.000000e+00> : vector<1xf32>
    %79 = vector.multi_reduction <add>, %78, %cst_26 [1, 2] : vector<1x7x16xf32> to vector<1xf32>
    %80 = vector.shape_cast %79 : vector<1xf32> to vector<1x1x1xf32>
    %81 = vector.extract %80[0, 0, 0] : f32 from vector<1x1x1xf32>
    %c0_27 = arith.constant 0 : index
    %c0_28 = arith.constant 0 : index
    %82 = vector.load %arg7[%c0_27, %c0_28] : memref<3x16xf32, #tpu.memory_space<vmem>>, vector<1x16xf32>
    %83 = vector.extract_strided_slice %8 {offsets = [0, 0], sizes = [1, 16], strides = [1, 1]} : vector<8x16xf32> to vector<1x16xf32>
    %84 = arith.subf %82, %83 : vector<1x16xf32>
    %85 = math.absf %84 : vector<1x16xf32>
    %c1_29 = arith.constant 1 : index
    %c0_30 = arith.constant 0 : index
    %86 = vector.load %arg7[%c1_29, %c0_30] : memref<3x16xf32, #tpu.memory_space<vmem>>, vector<1x16xf32>
    %87 = vector.extract_strided_slice %10 {offsets = [0, 0], sizes = [1, 16], strides = [1, 1]} : vector<8x16xf32> to vector<1x16xf32>
    %88 = arith.subf %86, %87 : vector<1x16xf32>
    %89 = math.absf %88 : vector<1x16xf32>
    %90 = arith.addf %85, %89 : vector<1x16xf32>
    %c2_31 = arith.constant 2 : index
    %c0_32 = arith.constant 0 : index
    %91 = vector.load %arg7[%c2_31, %c0_32] : memref<3x16xf32, #tpu.memory_space<vmem>>, vector<1x16xf32>
    %92 = vector.extract_strided_slice %12 {offsets = [0, 0], sizes = [1, 16], strides = [1, 1]} : vector<8x16xf32> to vector<1x16xf32>
    %93 = arith.subf %91, %92 : vector<1x16xf32>
    %94 = math.absf %93 : vector<1x16xf32>
    %95 = arith.addf %90, %94 : vector<1x16xf32>
    %cst_33 = arith.constant 0.333333343 : f32
    %96 = vector.broadcast %cst_33 : f32 to vector<1x16xf32>
    %97 = arith.mulf %95, %96 : vector<1x16xf32>
    %cst_34 = arith.constant 0.000000e+00 : f32
    %98 = vector.broadcast %cst_34 : f32 to vector<1x16xf32>
    %99 = arith.subf %98, %97 : vector<1x16xf32>
    %100 = math.exp %99 : vector<1x16xf32>
    %c0_35 = arith.constant 0 : index
    %c0_36 = arith.constant 0 : index
    %101 = vector.load %arg8[%c0_35, %c0_36] : memref<1x16xf32, #tpu.memory_space<vmem>>, vector<1x16xf32>
    %102 = arith.mulf %100, %101 : vector<1x16xf32>
    %c0_37 = arith.constant 0 : index
    %c0_38 = arith.constant 0 : index
    %103 = vector.load %arg9[%c0_37, %c0_38] : memref<1x16xf32, #tpu.memory_space<vmem>>, vector<1x16xf32>
    %104 = arith.mulf %102, %103 : vector<1x16xf32>
    %105 = vector.shape_cast %104 : vector<1x16xf32> to vector<1x1x16xf32>
    %cst_39 = arith.constant dense<0.000000e+00> : vector<1xf32>
    %106 = vector.multi_reduction <add>, %105, %cst_39 [1, 2] : vector<1x1x16xf32> to vector<1xf32>
    %107 = vector.shape_cast %106 : vector<1xf32> to vector<1x1x1xf32>
    %108 = vector.extract %107[0, 0, 0] : f32 from vector<1x1x1xf32>
    %109 = vector.shape_cast %103 : vector<1x16xf32> to vector<1x1x16xf32>
    %cst_40 = arith.constant dense<0.000000e+00> : vector<1xf32>
    %110 = vector.multi_reduction <add>, %109, %cst_40 [1, 2] : vector<1x1x16xf32> to vector<1xf32>
    %111 = vector.shape_cast %110 : vector<1xf32> to vector<1x1x1xf32>
    %112 = vector.extract %111[0, 0, 0] : f32 from vector<1x1x1xf32>
    %c0_i32_41 = arith.constant 0 : i32
    %113 = arith.cmpi sgt, %arg1, %c0_i32_41 : i32
    %114 = arith.extui %113 : i1 to i32
    %115 = arith.sitofp %114 : i32 to f32
    %116 = arith.mulf %115, %108 : f32
    %117 = arith.addf %77, %116 : f32
    %118 = arith.mulf %115, %112 : f32
    %119 = arith.addf %81, %118 : f32
    %120 = vector.extract_strided_slice %8 {offsets = [7, 0], sizes = [1, 16], strides = [1, 1]} : vector<8x16xf32> to vector<1x16xf32>
    %c0_42 = arith.constant 0 : index
    %c0_43 = arith.constant 0 : index
    %121 = vector.load %arg7[%c0_42, %c0_43] : memref<3x16xf32, #tpu.memory_space<vmem>>, vector<1x16xf32>
    tpu.vector_store %arg7[%c0_42, %c0_43], %120 {strides = array<i32>} : memref<3x16xf32, #tpu.memory_space<vmem>>, vector<1x16xf32>,
    %122 = vector.extract_strided_slice %10 {offsets = [7, 0], sizes = [1, 16], strides = [1, 1]} : vector<8x16xf32> to vector<1x16xf32>
    %c1_44 = arith.constant 1 : index
    %c0_45 = arith.constant 0 : index
    %123 = vector.load %arg7[%c1_44, %c0_45] : memref<3x16xf32, #tpu.memory_space<vmem>>, vector<1x16xf32>
    tpu.vector_store %arg7[%c1_44, %c0_45], %122 {strides = array<i32>} : memref<3x16xf32, #tpu.memory_space<vmem>>, vector<1x16xf32>,
    %124 = vector.extract_strided_slice %12 {offsets = [7, 0], sizes = [1, 16], strides = [1, 1]} : vector<8x16xf32> to vector<1x16xf32>
    %c2_46 = arith.constant 2 : index
    %c0_47 = arith.constant 0 : index
    %125 = vector.load %arg7[%c2_46, %c0_47] : memref<3x16xf32, #tpu.memory_space<vmem>>, vector<1x16xf32>
    tpu.vector_store %arg7[%c2_46, %c0_47], %124 {strides = array<i32>} : memref<3x16xf32, #tpu.memory_space<vmem>>, vector<1x16xf32>,
    %126 = vector.extract_strided_slice %17 {offsets = [7, 0], sizes = [1, 16], strides = [1, 1]} : vector<8x16xf32> to vector<1x16xf32>
    %c0_48 = arith.constant 0 : index
    %c0_49 = arith.constant 0 : index
    %127 = vector.load %arg8[%c0_48, %c0_49] : memref<1x16xf32, #tpu.memory_space<vmem>>, vector<1x16xf32>
    tpu.vector_store %arg8[%c0_48, %c0_49], %126 {strides = array<i32>} : memref<1x16xf32, #tpu.memory_space<vmem>>, vector<1x16xf32>,
    %128 = vector.extract_strided_slice %14 {offsets = [7, 0], sizes = [1, 16], strides = [1, 1]} : vector<8x16xf32> to vector<1x16xf32>
    %c0_50 = arith.constant 0 : index
    %c0_51 = arith.constant 0 : index
    %129 = vector.load %arg9[%c0_50, %c0_51] : memref<1x16xf32, #tpu.memory_space<vmem>>, vector<1x16xf32>
    tpu.vector_store %arg9[%c0_50, %c0_51], %128 {strides = array<i32>} : memref<1x16xf32, #tpu.memory_space<vmem>>, vector<1x16xf32>,
    %130 = tpu.iota {dimensions = array<i32: 2>} : vector<1x1x8x128xi32>
    %131 = tpu.iota {dimensions = array<i32: 3>} : vector<1x1x8x128xi32>
    %cst_52 = arith.constant 0.000000e+00 : f32
    %132 = vector.broadcast %cst_52 : f32 to vector<1x1x8x128xf32>
    %c0_i32_53 = arith.constant 0 : i32
    %133 = vector.broadcast %c0_i32_53 : i32 to vector<1x1x8x128xi32>
    %134 = arith.cmpi eq, %130, %133 : vector<1x1x8x128xi32>
    %c0_i32_54 = arith.constant 0 : i32
    %135 = vector.broadcast %c0_i32_54 : i32 to vector<1x1x8x128xi32>
    %136 = arith.cmpi eq, %131, %135 : vector<1x1x8x128xi32>
    %137 = arith.andi %134, %136 : vector<1x1x8x128xi1>
    %cst_55 = arith.constant 0.000000e+00 : f32
    %138 = vector.broadcast %46 : f32 to vector<1x1x8x128xf32>
    %139 = vector.broadcast %cst_55 : f32 to vector<1x1x8x128xf32>
    %140 = arith.select %137, %138, %139 : vector<1x1x8x128xi1>, vector<1x1x8x128xf32>
    %141 = arith.addf %132, %140 : vector<1x1x8x128xf32>
    %c0_i32_56 = arith.constant 0 : i32
    %142 = vector.broadcast %c0_i32_56 : i32 to vector<1x1x8x128xi32>
    %143 = arith.cmpi eq, %130, %142 : vector<1x1x8x128xi32>
    %c1_i32 = arith.constant 1 : i32
    %144 = vector.broadcast %c1_i32 : i32 to vector<1x1x8x128xi32>
    %145 = arith.cmpi eq, %131, %144 : vector<1x1x8x128xi32>
    %146 = arith.andi %143, %145 : vector<1x1x8x128xi1>
    %cst_57 = arith.constant 0.000000e+00 : f32
    %147 = vector.broadcast %50 : f32 to vector<1x1x8x128xf32>
    %148 = vector.broadcast %cst_57 : f32 to vector<1x1x8x128xf32>
    %149 = arith.select %146, %147, %148 : vector<1x1x8x128xi1>, vector<1x1x8x128xf32>
    %150 = arith.addf %141, %149 : vector<1x1x8x128xf32>
    %c0_i32_58 = arith.constant 0 : i32
    %151 = vector.broadcast %c0_i32_58 : i32 to vector<1x1x8x128xi32>
    %152 = arith.cmpi eq, %130, %151 : vector<1x1x8x128xi32>
    %c2_i32 = arith.constant 2 : i32
    %153 = vector.broadcast %c2_i32 : i32 to vector<1x1x8x128xi32>
    %154 = arith.cmpi eq, %131, %153 : vector<1x1x8x128xi32>
    %155 = arith.andi %152, %154 : vector<1x1x8x128xi1>
    %cst_59 = arith.constant 0.000000e+00 : f32
    %156 = vector.broadcast %117 : f32 to vector<1x1x8x128xf32>
    %157 = vector.broadcast %cst_59 : f32 to vector<1x1x8x128xf32>
    %158 = arith.select %155, %156, %157 : vector<1x1x8x128xi1>, vector<1x1x8x128xf32>
    %159 = arith.addf %150, %158 : vector<1x1x8x128xf32>
    %c0_i32_60 = arith.constant 0 : i32
    %160 = vector.broadcast %c0_i32_60 : i32 to vector<1x1x8x128xi32>
    %161 = arith.cmpi eq, %130, %160 : vector<1x1x8x128xi32>
    %c3_i32 = arith.constant 3 : i32
    %162 = vector.broadcast %c3_i32 : i32 to vector<1x1x8x128xi32>
    %163 = arith.cmpi eq, %131, %162 : vector<1x1x8x128xi32>
    %164 = arith.andi %161, %163 : vector<1x1x8x128xi1>
    %cst_61 = arith.constant 0.000000e+00 : f32
    %165 = vector.broadcast %119 : f32 to vector<1x1x8x128xf32>
    %166 = vector.broadcast %cst_61 : f32 to vector<1x1x8x128xf32>
    %167 = arith.select %164, %165, %166 : vector<1x1x8x128xi1>, vector<1x1x8x128xf32>
    %168 = arith.addf %159, %167 : vector<1x1x8x128xf32>
    %c0_62 = arith.constant 0 : index
    %c0_63 = arith.constant 0 : index
    %c0_64 = arith.constant 0 : index
    %c0_65 = arith.constant 0 : index
    %169 = vector.load %arg6[%c0_62, %c0_63, %c0_64, %c0_65] : memref<1x1x8x128xf32, #tpu.memory_space<vmem>>, vector<1x1x8x128xf32>
    tpu.vector_store %arg6[%c0_62, %c0_63, %c0_64, %c0_65], %168 {strides = array<i32>} : memref<1x1x8x128xf32, #tpu.memory_space<vmem>>, vector<1x1x8x128xf32>,
    return
  }
  func.func @transform_0(%arg0: i32, %arg1: i32) -> (i32, i32, i32) {
    %c0_i32 = arith.constant 0 : i32
    %c0_i32_0 = arith.constant 0 : i32
    return %arg0, %arg1, %c0_i32 : i32, i32, i32
  }
  func.func @transform_1(%arg0: i32, %arg1: i32) -> (i32, i32, i32) {
    %c0_i32 = arith.constant 0 : i32
    %c0_i32_0 = arith.constant 0 : i32
    return %arg0, %arg1, %c0_i32 : i32, i32, i32
  }
  func.func @transform_2(%arg0: i32, %arg1: i32) -> (i32, i32, i32, i32) {
    %c0_i32 = arith.constant 0 : i32
    %c0_i32_0 = arith.constant 0 : i32
    %c0_i32_1 = arith.constant 0 : i32
    return %c0_i32, %arg0, %arg1, %c0_i32_0 : i32, i32, i32, i32
  }
  func.func @transform_3(%arg0: i32, %arg1: i32) -> (i32, i32, i32) {
    %c0_i32 = arith.constant 0 : i32
    %c0_i32_0 = arith.constant 0 : i32
    return %arg0, %arg1, %c0_i32 : i32, i32, i32
  }
  func.func @transform_4(%arg0: i32, %arg1: i32) -> (i32, i32, i32, i32) {
    %c0_i32 = arith.constant 0 : i32
    %c0_i32_0 = arith.constant 0 : i32
    %c0_i32_1 = arith.constant 0 : i32
    return %arg0, %arg1, %c0_i32, %c0_i32_0 : i32, i32, i32, i32
  }
}

</mosaic_0001>

<bundles_post_ra>
// kernel: tpu_custom_call.1
= control target key start
LH: loop header
LB: loop body
LE: loop exit
PB: predicated region body
PF: predicated region fallthrough
CT: control target
= control target key end

     0   :  { %s1387_s0 = inlined_call_operand.hbm [shape: f32[2,16,16], index: 0, kind: input, shape index: {}]   ;;  %s1388_s1 = inlined_call_operand.hbm [shape: f32[2,16,16], index: 1, kind: input, shape index: {}]   ;;  %s1389_s2 = inlined_call_operand.hbm [shape: f32[3,2,16,16], index: 2, kind: input, shape index: {}]   ;;  %s1390_s3 = inlined_call_operand.hbm [shape: f32[2,16,16], index: 3, kind: input, shape index: {}]   ;;  %s1391_s4 = inlined_call_operand.hbm [shape: f32[2,2,8,128], index: 4, kind: output, shape index: {}]  }
   0x1   :  { %1398 = sst [smem:[#allocation25_spill]] %s1387_s0 }
   0x2   :  { %1399 = sst [smem:[#allocation26_spill]] %s1388_s1 }
   0x3   :  { %1400 = sst [smem:[#allocation27_spill]] %s1389_s2 }
   0x4   :  { %9 = vsyncpa [#allocation6], 0 }
   0x5   :  { %11 = vsyncpa [#allocation6 + $0x1], 0 }
   0x6   :  { %12 = vsyncpa [#allocation9], 0 }
   0x7   :  { %14 = vsyncpa [#allocation9 + $0x1], 0 }
   0x8   :  { %15 = vsyncpa [#allocation12], 0 }
   0x9   :  { %17 = vsyncpa [#allocation12 + $0x1], 0 }
   0xa   :  { %18 = vsyncpa [#allocation7], 0 }
   0xb   :  { %20 = vsyncpa [#allocation7 + $0x1], 0  ;;  %s1137_s15 = smov 0   ;;  %s1139_s16 = smov 0  }
   0xc   :  { %s1141_s17 = smov 0   ;;  %s1143_s18 = smov 0  }
   0xd   :  { %s1145_s19 = smov 0   ;;  %s1147_s20 = smov 0  }
   0xe   :  { %s1149_s21 = smov 0   ;;  %s1151_s22 = smov 0  }
   0xf LB: > { %1401 = sst [smem:[#allocation18_spill]] %s1085_s17  ;;  %s1178_s23 = sadd.s32 4294967295, %s1105_s22   ;;  %s1105_s22 = sphi %s1151_s22, %s26_s22   ;;  %s1101_s21 = sphi %s1149_s21, %s1423_s21   ;;  %s1097_s20 = sphi %s1147_s20, %s1422_s20   ;;  %s1093_s19 = sphi %s1145_s19, %s1421_s19   ;;  %s1089_s18 = sphi %s1143_s18, %s1420_s18   ;;  %s1085_s17 = sphi %s1141_s17, %s1419_s17   ;;  %s1081_s16 = sphi %s1139_s16, %s1425_s16   ;;  %s1077_s15 = sphi %s1137_s15, %s1424_s15  }
  0x10   : > { %1402 = sst [smem:[#allocation19_spill]] %s1097_s20  ;;  %s732_s24 = sadd.s32 4294967294, %s1105_s22  }
  0x11   : > { %1403 = sst [smem:[#allocation20_spill]] %s1101_s21  ;;  %s35_s25 = sadd.s32 1, %s1097_s20 }
  0x12   : > { %s38_s26 = sadd.s32 1, %s1101_s21  ;;  %p36_p0 = scmp.ge.s32.totalorder %s35_s25, 2 }
  0x13   : > { %s47_s27 = sadd.s32 1, %s1085_s17  ;;  %p54_p1 = scmp.ne.s32.totalorder %s1085_s17, %s1081_s16 }
  0x14   : > { %p55_p2 = scmp.eq.s32.totalorder %s1105_s22, 0  ;;  %s1427_s25 = smov (%p36_p0, %s35_s25), 0 }
  0x15   : > { %1404 = sst [smem:[#allocation21_spill]] %s1427_s25  ;;  %s1429_s26 = smov (!%p36_p0, %s38_s26), %s1101_s21 }
  0x16   : > { %s43_s28 = ssub.s32 %s1097_s20, %s1427_s25  ;;  %p1192_p3 = por %p55_p2, %p54_p1 }
  0x17   : > { %p40_p4 = scmp.ge.s32.totalorder %s1429_s26, 2  ;;  %p60_p5 = scmp.ne.s32.totalorder %s1081_s16, %s1077_s15 }
  0x18   : > { %p61_p6 = scmp.eq.s32.totalorder %s1178_s23, 0  ;;  %p170_p7 = scmp.eq.s32.totalorder %s1178_s23, 3 }
  0x19   : > { %s1431_s26 = smov (%p40_p4, %s1429_s26), 0  ;;  %p176_p10 = scmp.eq.s32.totalorder %s732_s24, 3 }
  0x1a   : > { %1406 = sst [smem:[#allocation22_spill]] %s1431_s26  ;;  %p1202_p8 = por %p61_p6, %p60_p5 }
  0x1b   : > { %p1206_p9 = por %p170_p7, %p54_p1  ;;  %s42_s6 = ssub.s32 %s1101_s21, %s1431_s26 }
  0x1c   : > { %s44_s7 = sor.u32 %s43_s28, %s42_s6  ;;  %p1212_p12 = por %p176_p10, %p60_p5 }
  0x1d   : > { %p45_p11 = scmp.eq.s32.totalorder %s44_s7, 0  ;;  %p800_p13 = scmp.lt.s32.totalorder %s1105_s22, 4 }
  0x1e   : > { %s1409_s8 = scalar_select %p1212_p12, 1, 0 }
  0x1f   : > { %s1218_s9 = sand.u32 1, %s1085_s17   ;;  %s736_s12 = sshll.u32 %s1101_s21, 1 }
  0x20   : > { %1410 = sst [smem:[#allocation23_spill]] %s1409_s8  ;;  %s1224_s11 = sshll.u32 %s1218_s9, 3 }
  0x21   : > { %s1221_s10 = scalar_select %p45_p11, %s1085_s17, %s47_s27  }
  0x22   : > { %s204_s13 = sadd.s32 %s1097_s20, %s736_s12  ;;  %p1230_p0 = pnand %p800_p13, %p1192_p3 }
  0x23   : > { %1411 = sst [smem:[#allocation24_spill]] %s1221_s10  ;;  %s1234_s24 = sshll.u32 %s204_s13, 3 }
  0x24   : > { %s217_s28 = sand.u32 1, %s1105_s22   ;;  %s1413_s1 = sld [smem:[#allocation26_spill]] }
  0x25   : > { %s221_s25 = scalar_lea.vmem [#allocation8], %s1224_s11  ;;  %s218_s29 = scalar_lea.sflag [#allocation9], %s217_s28 }
  0x26   : > { %s231_s12 = sshll.u32 %s221_s25, 4  ;;  %s759_s13 = smul.u32 24, %s1218_s9  ;;  %s232_s12 = int_to_ptr.vmem [resolvable:$true] %s231_s12 }
  0x27   : > { %s1414_s2 = sld [smem:[#allocation27_spill]]  ;;  %p746_p1 = scmp.ge.s32.totalorder %s1105_s22, 1 }
  0x28   : > { %s242_s27 = scalar_lea.vmem [#allocation10], %s759_s13  ;;  %p280_p2 = scmp.lt.s32.totalorder %s1105_s22, 5 }
  0x29   : > { %s1416_s0 = sld [smem:[#allocation25_spill]]  ;;  %s200_s21 = scalar_lea.vmem [#allocation5], %s1224_s11 }
  0x2a   : > { %s227_s7 = scalar_lea.hbm %s1413_s1, %s1234_s24  ;;  %p1251_p3 = pnand %p746_p1, %p280_p2 }
  0x2b   : > { %s229_s26 = sshll.u32 %s227_s7, 4  ;;  %s251_s7 = sshll.u32 %s242_s27, 4  ;;  %s230_s26 = int_to_ptr.hbm [resolvable:$true] %s229_s26  ;;  %s252_s7 = int_to_ptr.vmem [resolvable:$true] %s251_s7 }
  0x2c   : > { %789 = dma.hbm_to_vmem [thread:$0]  (!%p1230_p0), %s230_s26, 128, %s232_s12, %s218_s29  }
  0x2d   : > { %s248_s10 = scalar_lea.hbm %s1414_s2, %s1234_s24  ;;  %s210_s12 = sshll.u32 %s200_s21, 4  ;;  %s211_s12 = int_to_ptr.vmem [resolvable:$true] %s210_s12 }
  0x2e   : > { %s249_s6 = sshll.u32 %s248_s10, 4  ;;  %s197_s13 = scalar_lea.sflag [#allocation6], %s1218_s9  ;;  %s250_s6 = int_to_ptr.hbm [resolvable:$true] %s249_s6 }
  0x2f   : > { %s206_s20 = scalar_lea.hbm %s1416_s0, %s1234_s24  ;;  %s1107_s27 = smov 512  }
  0x30   : > { %s208_s10 = sshll.u32 %s206_s20, 4  ;;  %s1108_s1 = smov 128   ;;  %s209_s10 = int_to_ptr.hbm [resolvable:$true] %s208_s10 }
  0x31   : > { %786 = dma.hbm_to_vmem [thread:$0]  (!%p1230_p0), %s209_s10, 128, %s211_s12, %s197_s13  }
  0x32   : > { %s1109_s2 = smov 8   ;;  %s271_s26 = scalar_lea.hbm %s1390_s3, %s1234_s24 }
  0x33   : > { %792 = dma.hbm_to_vmem [thread:$0]  (!%p1230_p0), %s250_s6, 384, %s252_s7, %s218_s29, %s1107_s27, %s1108_s1, %s1109_s2  }
  0x34   : > { %s265_s28 = scalar_lea.vmem [#allocation11], %s1224_s11  ;;  %s273_s21 = sshll.u32 %s271_s26, 4  ;;  %s274_s21 = int_to_ptr.hbm [resolvable:$true] %s273_s21 }
  0x35   : > { %s275_s0 = sshll.u32 %s265_s28, 4  ;;  %s262_s20 = scalar_lea.sflag [#allocation12], %s1218_s9  ;;  %s276_s0 = int_to_ptr.vmem [resolvable:$true] %s275_s0 }
  0x36   : > { %795 = dma.hbm_to_vmem [thread:$0]  (!%p1230_p0), %s274_s21, 128, %s276_s0, %s262_s20  }
  0x37   : > { %284 = sbr.rel (%p1251_p3) target bundleno = 424 (0x1a8), region = 36  ;;  %s1276_s12 = sand.u32 (!%p1251_p3), 1, %s1081_s16  }
  0x38   : > { %s1279_s1 = sshll.u32 (!%p1251_p3), %s1276_s12, 3  ;;  %s287_s2 = scalar_lea.sflag (!%p1251_p3), [#allocation6], %s1276_s12 }
  0x39   : > { %s290_s17 = scalar_lea.vmem (!%p1251_p3), [#allocation5], %s1279_s1 }
  0x3c   : > { %1060 = dma.done.wait (%p1202_p8), %s287_s2, 128  }
  0x3d   : > { %1062 = vsyncadd (%p1202_p8), %s287_s2, 4294967168  ;;  %s296_s0 = sand.u32 1, %s1178_s23   ;;  %s300_s9 = scalar_lea.vmem [#allocation8], %s1279_s1 }
  0x3e   : > { %s297_s8 = scalar_lea.sflag [#allocation9], %s296_s0 }
  0x3f   : > { %1064 = dma.done.wait (%p1202_p8), %s297_s8, 512  }
  0x40   : > { %1066 = vsyncadd (%p1202_p8), %s297_s8, 4294966784  ;;  %s760_s11 = smul.u32 24, %s1276_s12  ;;  %s317_s24 = scalar_lea.sflag [#allocation12], %s1276_s12 }
  0x41   : > { %s320_s29 = scalar_lea.vmem [#allocation11], %s1279_s1 }
  0x42   : > { %s310_s14 = scalar_lea.vmem [#allocation10], %s760_s11 }
  0x43   : > { %1068 = dma.done.wait (%p1202_p8), %s317_s24, 128  }
  0x44   : > { %1070 = vsyncadd (%p1202_p8), %s317_s24, 4294967168  ;;  %s360_s23 = scalar_lea.vmem [#allocation13], %s1279_s1  ;;  %p751_p4 = scmp.ne.s32.totalorder %s1089_s18, 0 }
  0x46   : > { %364 = sbr.rel (%p751_p4) target bundleno = 79 (0x4f), region = 56 }
  0x4b   : > { %vm365_vm0 = vcmask 124928   ;;  %vm367_vm1 = vcmask 122880   ;;  %v1110_v0 = vmov 0.0  }
  0x4c   : > { %366 = vst.msk [vmem:[#allocation2] sm:$0x7] %vm365_vm0, %v1110_v0 }
  0x4d   : > { %368 = vst.msk [vmem:[#allocation3] sm:$0x1] %vm367_vm1, %v1110_v0 }
  0x4e   : > { %369 = vst.msk [vmem:[#allocation4] sm:$0x1] %vm367_vm1, %v1110_v0 }
  0x4f PF: > { %v1302_v1 = vld [vmem:[%s310_s14] sm:$0xff]  ;;  %s1111_s6 = smov 127   ;;  %v1305_v2 = vld [vmem:[%s310_s14 + $0x10] sm:$0xff]  ;;  %v1308_v3 = vld [vmem:[%s310_s14 + $0x8] sm:$0xff]  ;;  %vm415_vm2 = vcmask 121856   ;;  %vm456_vm4 = vcmask 129024  }
  0x50   : > { %390 = vrot.lane.b32.xlu0 %v1302_v1, %s1111_s6  ;;  %403 = vrot.lane.b32.xlu1 %v1305_v2, %s1111_s6  ;;  %v436_v4 = vrot.slane %v1302_v1, 1  ;;  %v440_v5 = vrot.slane %v1308_v3, 1  ;;  %v445_v8 = vrot.slane %v1305_v2, 1  ;;  %v370_v14 = vld [vmem:[%s290_s17] sm:$0xff]  ;;  %v371_v15 = vld [vmem:[%s300_s9] sm:$0xff]  ;;  %vm496_vm5 = vcmask 122880  }
  0x51   : > { %v378_v18 = vsub.f32 %v370_v14, %v371_v15  ;;  %v377_v33 = vld [vmem:[%s320_s29] sm:$0xff]  ;;  %vm524_vm6 = vcmask 130055   ;;  %p517_p5 = scmp.gt.s32.totalorder %s1089_s18, 0  ;;  %s755_s7 = sshll.u32 %s1093_s19, 1 }
  0x52   : > { %v438_v6 = vsub.f32 %v1302_v1, %v436_v4  ;;  %v442_v7 = vsub.f32 %v1308_v3, %v440_v5  ;;  %v447_v11 = vsub.f32 %v1305_v2, %v445_v8  ;;  %v426_v36 = vsel %vm415_vm2, %v377_v33, 0.0  ;;  %s567_s27 = sadd.s32 %s1089_s18, %s755_s7  ;;  %s571_s14 = sshll.u32 %s360_s23, 4  ;;  %s572_s14 = int_to_ptr.vmem [resolvable:$true] %s571_s14 }
  0x53   : > { %v477_v12 = vld [vmem:[#allocation2] sm:$0x1]  ;;  %v480_v13 = vld [vmem:[#allocation2 + $0x1] sm:$0x1]  ;;  %v379_v22 = vand.u32 2147483647, %v378_v18  ;;  %427 = vadd.xlane.f32.xlu2 %v426_v36 }
  0x54   : > { %v439_v9 = vand.u32 2147483647, %v438_v6  ;;  %v443_v10 = vand.u32 2147483647, %v442_v7  ;;  %v448_v17 = vand.u32 2147483647, %v447_v11  ;;  %v478_v19 = vsub.f32 %v477_v12, %v1302_v1 }
  0x55   : > { %v481_v20 = vsub.f32 %v480_v13, %v1308_v3  ;;  %v380_v24 = vadd.f32 1.0, %v379_v22  ;;  %v484_v25 = vld [vmem:[#allocation2 + $0x2] sm:$0x1]  ;;  %v383_v34 = vmul.f32 -0.5, %v379_v22  ;;  %vm387_vm3 = vcmp.lt.f32.partialorder %v379_v22, 0.0004427343 }
  0x56   : > { %v444_v16 = vadd.f32 %v443_v10, %v439_v9  ;;  %v479_v27 = vand.u32 2147483647, %v478_v19  ;;  %v485_v29 = vsub.f32 %v484_v25, %v1305_v2  ;;  %v492_v50 = vld [vmem:[#allocation3] sm:$0x1]  ;;  %v494_v52 = vld [vmem:[#allocation4] sm:$0x1] }
  0x57   : > { %v482_v28 = vand.u32 2147483647, %v481_v20  ;;  %871 = vlog2.f32 %v380_v24  ;;  %v384_v37 = vadd.f32 1.0, %v383_v34  ;;  %v467_v55 = vsel %vm456_vm4, %v377_v33, 0.0  ;;  %525 = vst.msk [vmem:[#allocation2 - $0x7] sm:$0x80] %vm524_vm6, %v1302_v1 }
  0x58   : > { %396 = vrot.lane.b32.xlu0 %v1308_v3, %s1111_s6  ;;  %v449_v21 = vadd.f32 %v448_v17, %v444_v16  ;;  %v486_v32 = vand.u32 2147483647, %v485_v29  ;;  %526 = vst.msk [vmem:[#allocation2 - $0x6] sm:$0x80] %vm524_vm6, %v1308_v3  ;;  %v507_v56 = vsel %vm496_vm5, %v494_v52, 0.0  ;;  %s756_s20 = sshll.u32 %s567_s27, 3 }
  0x59   : > { %v483_v31 = vadd.f32 %v482_v28, %v479_v27  ;;  %v385_v41 = vmul.f32 %v384_v37, %v379_v22  ;;  %527 = vst.msk [vmem:[#allocation2 - $0x5] sm:$0x80] %vm524_vm6, %v1305_v2  ;;  %s518_s30 = scalar_select %p517_p5, 1, 0 }
  0x5a   : > { %v450_v23 = vmul.f32 0.33333334, %v449_v21  ;;  %529 = vst.msk [vmem:[#allocation4 - $0x7] sm:$0x80] %vm524_vm6, %v377_v33  ;;  %s569_s9 = scalar_lea.hbm %s1391_s4, %s756_s20  ;;  %s557_s29 = scalar_lea.sflag [#allocation7], %s1276_s12 }
  0x5b   : > { %v487_v35 = vadd.f32 %v486_v32, %v483_v31  ;;  %s519_s10 = scvt.s32.f32 %s518_s30  ;;  %s573_s24 = sshll.u32 %s569_s9, 4  ;;  %s574_s24 = int_to_ptr.hbm [resolvable:$true] %s573_s24 }
  0x5c   : > { %v451_v26 = vsub.f32 0.0, %v450_v23  ;;  %s1013_s6 = sshra.s32 %s574_s24, 4  ;;  %s1014_s6 = int_to_ptr.hbm [resolvable:$true] %s1013_s6 }
  0x5d   : > { %v488_v38 = vmul.f32 0.33333334, %v487_v35  ;;  %v872_v39 = vpop.eup %871  ;;  %s1015_s30 = scalar_lea.hbm %s1014_s6, 8  ;;  %p1020_p10 = scmp.lt.s32.totalorder %s1014_s6, %s1391_s4 }
  0x5e   : > { %v452_v30 = vmul.f32 1.442695, %v451_v26  ;;  %v382_v40 = vmul.f32 0.6931472, %v872_v39  ;;  %p1016_p6 = scmp.ne.s32.totalorder %s1014_s6, %s1015_s30 }
  0x5f   : > { %v489_v42 = vsub.f32 0.0, %v488_v38 }
  0x60   : > { %873 = vpow2.f32 %v452_v30  ;;  %v388_v44 = vsel %vm387_vm3, %v385_v41, %v382_v40  ;;  %p1017_p7 = pnand %p1016_p6, %p1206_p9 }
  0x61   : > { %v490_v45 = vmul.f32 1.442695, %v489_v42  ;;  %528 = vst.msk [vmem:[#allocation3 - $0x7] sm:$0x80] %vm524_vm6, %v388_v44 }
  0x62   : > { %p1018_p8 = pneg %p1017_p7 }
  0x63   : > { %875 = vpow2.f32 %v490_v45 }
  0x66   : > { %v874_v43 = vpop.eup %873 }
  0x67   : > { %v454_v46 = vmul.f32 %v874_v43, %v388_v44 }
  0x69   : > { %v455_v47 = vmul.f32 %v454_v46, %v377_v33  ;;  %v876_v49 = vpop.eup %875 }
  0x6a   : > { %v493_v51 = vmul.f32 %v876_v49, %v492_v50 }
  0x6b   : > { %v457_v48 = vsel %vm456_vm4, %v455_v47, 0.0 }
  0x6c   : > { %458 = vadd.xlane.f32.xlu2 %v457_v48  ;;  %v495_v53 = vmul.f32 %v494_v52, %v493_v51 }
  0x6e   : > { %v497_v54 = vsel %vm496_vm5, %v495_v53, 0.0  ;;  %v530_v53 = vlaneseq }
  0x74   : > { %498 = vadd.xlane.f32.xlu2 %v497_v54  ;;  %v531_v54 = vshrl.u32 %v530_v53, 7 }
  0x76   : > { %vm534_vm7 = vcmp.eq.s32.totalorder %v531_v54, 0 }
  0x7c   : > { %508 = vadd.xlane.f32.xlu2 %v507_v56 }
  0x82   : > { %468 = vadd.xlane.f32.xlu0 %v467_v55  ;;  %v533_v55 = vand.u32 127, %v530_v53 }
  0x84   : > { %vm535_vm8 = vcmp.eq.s32.totalorder %v533_v55, 0  ;;  %vm540_vm9 = vcmp.eq.s32.totalorder %v533_v55, 1  ;;  %vm545_vm12 = vcmp.eq.s32.totalorder %v533_v55, 2  ;;  %vm550_vm13 = vcmp.eq.s32.totalorder %v533_v55, 3 }
  0x85   : > { %vm536_vm10 = vmand %vm534_vm7, %vm535_vm8 }
  0x86   : > { %vm541_vm11 = vmand %vm534_vm7, %vm540_vm9 }
  0x87   : > { %vm546_vm14 = vmand %vm534_vm7, %vm545_vm12 }
  0x88   : > { %vm551_vm15 = vmand %vm534_vm7, %vm550_vm13 }
  0xc2   : > { %v391_v57 = vpop.permute.xlu0 %390  ;;  %v404_v58 = vpop.permute.xlu1 %403 }
  0xc3   : > { %v393_v59 = vsub.f32 %v1302_v1, %v391_v57  ;;  %v406_v60 = vsub.f32 %v1305_v2, %v404_v58 }
  0xc5   : > { %v394_v63 = vand.u32 2147483647, %v393_v59  ;;  %v407_v4 = vand.u32 2147483647, %v406_v60 }
  0xc6   : > { %v428_v1 = vpop.xlane.xlu2 %427 }
  0xca   : > { %v397_v61 = vpop.permute.xlu0 %396 }
  0xcb   : > { %v399_v62 = vsub.f32 %v1308_v3, %v397_v61  ;;  %v429_v3 = vrot.slane %v428_v1, 4 }
  0xcd   : > { %v400_v0 = vand.u32 2147483647, %v399_v62  ;;  %v430_v20 = vadd.f32 %v429_v3, %v428_v1 }
  0xcf   : > { %v401_v5 = vadd.f32 %v400_v0, %v394_v63  ;;  %v431_v25 = vrot.slane %v430_v20, 2 }
  0xd1   : > { %v408_v6 = vadd.f32 %v407_v4, %v401_v5  ;;  %v432_v34 = vadd.f32 %v431_v25, %v430_v20 }
  0xd3   : > { %v409_v7 = vmul.f32 0.33333334, %v408_v6  ;;  %v433_v41 = vrot.slane %v432_v34, 1 }
  0xd5   : > { %v410_v8 = vsub.f32 0.0, %v409_v7  ;;  %v434_v47 = vadd.f32 %v433_v41, %v432_v34 }
  0xd7   : > { %v411_v9 = vmul.f32 1.442695, %v410_v8 }
  0xd9   : > { %877 = vpow2.f32 %v411_v9 }
  0xdf   : > { %v878_v10 = vpop.eup %877  ;;  %v459_v2 = vpop.xlane.xlu2 %458 }
  0xe0   : > { %v413_v11 = vmul.f32 %v878_v10, %v388_v44  ;;  %v460_v16 = vrot.slane %v459_v2, 4 }
  0xe2   : > { %v414_v12 = vmul.f32 %v413_v11, %v377_v33  ;;  %v461_v22 = vadd.f32 %v460_v16, %v459_v2 }
  0xe4   : > { %v416_v13 = vsel %vm415_vm2, %v414_v12, 0.0  ;;  %v462_v28 = vrot.slane %v461_v22, 2 }
  0xe5   : > { %417 = vadd.xlane.f32.xlu1 %v416_v13 }
  0xe6   : > { %v463_v36 = vadd.f32 %v462_v28, %v461_v22 }
  0xe7   : > { %v499_v14 = vpop.xlane.xlu2 %498 }
  0xe8   : > { %v500_v19 = vrot.slane %v499_v14, 4  ;;  %v464_v43 = vrot.slane %v463_v36, 1 }
  0xea   : > { %v501_v24 = vadd.f32 %v500_v19, %v499_v14  ;;  %v465_v49 = vadd.f32 %v464_v43, %v463_v36 }
  0xec   : > { %v502_v31 = vrot.slane %v501_v24, 2 }
  0xee   : > { %v503_v39 = vadd.f32 %v502_v31, %v501_v24 }
  0xef   : > { %v509_v17 = vpop.xlane.xlu2 %508 }
  0xf0   : > { %v510_v21 = vrot.slane %v509_v17, 4  ;;  %v504_v46 = vrot.slane %v503_v39, 1 }
  0xf2   : > { %v511_v26 = vadd.f32 %v510_v21, %v509_v17  ;;  %v505_v51 = vadd.f32 %v504_v46, %v503_v39 }
  0xf4   : > { %v512_v33 = vrot.slane %v511_v26, 2 }
  0xf5   : > { %v469_v15 = vpop.xlane.xlu0 %468 }
  0xf6   : > { %v470_v18 = vrot.slane %v469_v15, 4  ;;  %v513_v40 = vadd.f32 %v512_v33, %v511_v26 }
  0xf8   : > { %v471_v23 = vadd.f32 %v470_v18, %v469_v15  ;;  %v514_v48 = vrot.slane %v513_v40, 1 }
  0xfa   : > { %v472_v30 = vrot.slane %v471_v23, 2  ;;  %v515_v52 = vadd.f32 %v514_v48, %v513_v40 }
  0xfc   : > { %v473_v37 = vadd.f32 %v472_v30, %v471_v23 }
  0xfe   : > { %v474_v44 = vrot.slane %v473_v37, 1 }
 0x100   : > { %v475_v50 = vadd.f32 %v474_v44, %v473_v37 }
 0x158   : > { %v418_v27 = vpop.xlane.xlu1 %417 }
 0x159   : > { %v419_v29 = vrot.slane %v418_v27, 4 }
 0x15b   : > { %v420_v32 = vadd.f32 %v419_v29, %v418_v27 }
 0x15d   : > { %v421_v35 = vrot.slane %v420_v32, 2 }
 0x15f   : > { %v422_v38 = vadd.f32 %v421_v35, %v420_v32 }
 0x161   : > { %v423_v42 = vrot.slane %v422_v38, 1 }
 0x163   : > { %v424_v45 = vadd.f32 %v423_v42, %v422_v38 }
 0x165   : > { %761 = vpush %v424_v45 }
 0x166   : > { %763 = vpush %v434_v47 }
 0x167   : > { %765 = vpush %v465_v49 }
 0x168   : > { %767 = vpush %v475_v50 }
 0x169   : > { %769 = vpush %v505_v51 }
 0x16a   : > { %771 = vpush %v515_v52 }
 0x196   : > { %s762_s25 = spop %761 }
 0x197   : > { %s764_s13 = spop %763  ;;  %v537_v56 = vstv %s762_s25 }
 0x198   : > { %s766_s26 = spop %765  ;;  %v542_v57 = vstv %s764_s13  ;;  %v538_v58 = vsel %vm536_vm10, %v537_v56, 0.0 }
 0x199   : > { %s768_s28 = spop %767  ;;  %v543_v59 = vsel %vm541_vm11, %v542_v57, 0.0 }
 0x19a   : > { %s770_s21 = spop %769  ;;  %v544_v60 = vadd.f32 %v543_v59, %v538_v58 }
 0x19b   : > { %s520_s19 = smul.f32 %s770_s21, %s519_s10  ;;  %s772_s2 = spop %771 }
 0x19c   : > { %s522_s17 = smul.f32 %s772_s2, %s519_s10  ;;  %s1019_s10 = scalar_lea.hbm %s1391_s4, 32 }
 0x19d   : > { %s521_s0 = sadd.f32 %s766_s26, %s520_s19  ;;  %p1021_p11 = scmp.lt.s32.totalorder %s1019_s10, %s1015_s30 }
 0x19e   : > { %s523_s11 = sadd.f32 %s768_s28, %s522_s17 }
 0x19f   : > { %v547_v61 = vstv %s521_s0  ;;  %p1022_p13 = por %p1021_p11, %p1020_p10 }
 0x1a0   : > { %v548_v62 = vsel %vm546_vm14, %v547_v61, 0.0  ;;  %v552_v63 = vstv %s523_s11 }
 0x1a1   : > { %v549_v0 = vadd.f32 %v548_v62, %v544_v60  ;;  %v553_v4 = vsel %vm551_vm15, %v552_v63, 0.0  ;;  %p1023_p0 = pnand %p1022_p13, %p1018_p8 }
 0x1a3   : > { %v554_v5 = vadd.f32 %v553_v4, %v549_v0 }
 0x1a5   : > { %555 = vst [vmem:[%s360_s23] sm:$0xff] %v554_v5 }
 0x1a6   : > { %1026 = shalt.err (!%p1023_p0)
}
 0x1a7   : > { %781 = dma.vmem_to_hbm [thread:$0]  (%p1206_p9), %s572_s14, 128, %s574_s24, %s557_s29  }
 0x1a8 PF: > { %p801_p1 = scmp.ge.s32.totalorder %s1105_s22, 2  ;;  %s585_s1 = sand.u32 1, %s1077_s15  }
 0x1a9   : > { %s586_s23 = scalar_lea.sflag [#allocation7], %s585_s1 }
 0x1aa   : > { %p797_p2 = pnand %p801_p1, %p1212_p12 }
 0x1ac   : > { %p798_p3 = pneg %p797_p2 }
 0x1ae   : > { %1072 = dma.done.wait (%p798_p3), %s586_s23, 128  }
 0x1af   : > { %1074 = vsyncadd (%p798_p3), %s586_s23, 4294967168  ;;  %s26_s22 = sadd.s32 1, %s1105_s22   ;;  %s1418_s26 = sld [smem:[#allocation18_spill]] }
 0x1b0   : > { %p23_p4 = scmp.ge.s32.totalorder %s26_s22, 6   ;;  %s1419_s17 = sld [smem:[#allocation24_spill]] }
 0x1b1   : > { %s1420_s18 = sld [smem:[#allocation19_spill]]  ;;  %s1424_s15 = smov %s1081_s16 }
 0x1b2   : > { %s1421_s19 = sld [smem:[#allocation20_spill]]  ;;  %25 = sbr.rel (!%p23_p4) target bundleno = 15 (0xf), region = 124 }
 0x1b3   : > { %s1422_s20 = sld [smem:[#allocation21_spill]] }
 0x1b4   : > { %s1423_s21 = sld [smem:[#allocation22_spill]] }
 0x1b5   : > { %s1425_s16 = smov %s1418_s26 }
 0x1b7   :  { %592 = vsyncpa [#allocation6], 1 }
 0x1b8   :  { %594 = vsyncpa [#allocation6 + $0x1], 1 }
 0x1b9   :  { %595 = vsyncpa [#allocation9], 1 }
 0x1ba   :  { %597 = vsyncpa [#allocation9 + $0x1], 1 }
 0x1bb   :  { %598 = vsyncpa [#allocation12], 1 }
 0x1bc   :  { %600 = vsyncpa [#allocation12 + $0x1], 1 }
 0x1bd   :  { %601 = vsyncpa [#allocation7], 1 }
 0x1be   :  { %603 = vsyncpa [#allocation7 + $0x1], 1 }

</bundles_post_ra>
